<compile_context>
chip_gen: v5e
topology: v5e:2x2
jax: 0.10.0
libtpu: 0.0.40
codegen_flags: <defaults>
</compile_context>

<pallas_src>
import jax
import jax.numpy as jnp
from jax.experimental import pallas as pl
from jax.experimental.pallas import tpu as pltpu


def _mlp_kernel(xT_ref, w1_ref, b1_ref, w2_ref, b2_ref, w3_ref, b3_ref,
                w4_ref, b4_ref, o_ref):
    # x^T tile: (dim_in, tb) f32 in VMEM; cast to bf16 for the MXU (VPU cast).
    xT = xT_ref[...].astype(jnp.bfloat16)
    # Layer 1: (d1, dim_in)bf16 @ (dim_in, tb)bf16 -> (d1, tb) f32, bias + ReLU.
    h = jnp.dot(w1_ref[...], xT, preferred_element_type=jnp.float32)
    h = jnp.maximum(h + b1_ref[...], 0.0)
    # Layer 2.
    h = jnp.dot(w2_ref[...], h.astype(jnp.bfloat16),
                preferred_element_type=jnp.float32)
    h = jnp.maximum(h + b2_ref[...], 0.0)
    # Layer 3.
    h = jnp.dot(w3_ref[...], h.astype(jnp.bfloat16),
                preferred_element_type=jnp.float32)
    h = jnp.maximum(h + b3_ref[...], 0.0)                     # (d3, tb) f32
    # Output head (1 output unit): VPU multiply + sublane (XLU) reduction in
    # f32 instead of wasting an MXU pass on a single output row.
    logits = jnp.sum(h * w4_ref[...], axis=0, keepdims=True) + b4_ref[0, 0]
    # (1, tb) lane-dense store -> unmasked vst.
    o_ref[...] = jax.nn.sigmoid(logits).astype(o_ref.dtype)


def apiprefer_linear_net(x, params, *, tile_b=2048):
    """Fused forward pass.

    x: (B, dim_in) f32 (PyTorch layout).  Returns (B, 1) f32.
    params are PyTorch nn.Linear layout: w_i = weight (out, in), b_i = bias (out,).
    """
    w1, b1, w2, b2, w3, b3, w4, b4 = params
    B, dim_in = x.shape
    d1, d2, d3 = w1.shape[0], w2.shape[0], w3.shape[0]

    # Transposed activations: batch lives on the lane axis inside the kernel.
    xT = x.T                                    # (dim_in, B), one-off HBM transpose
    # bf16 MXU operands (cast once here, outside the grid; tiny arrays).
    w1b = w1.astype(jnp.bfloat16)
    w2b = w2.astype(jnp.bfloat16)
    w3b = w3.astype(jnp.bfloat16)
    # Biases as (out, 1) columns so they broadcast over the lane/batch axis.
    b1c = b1.reshape(d1, 1)
    b2c = b2.reshape(d2, 1)
    b3c = b3.reshape(d3, 1)
    w4c = w4.reshape(d3, 1)                     # head weight as a column (VPU head)
    b4c = b4.reshape(1, 1)                      # scalar -> SMEM

    # Batch tile: full batch if small (full-dim blocks are always layout-legal),
    # otherwise a multiple of 128 to satisfy the lane rule.  Ragged last tiles
    # are handled by Pallas (padded reads, masked writeback).
    if B <= tile_b:
        tb = B
    else:
        tb = max(128, (tile_b // 128) * 128)
    grid = (pl.cdiv(B, tb),)

    const = lambda i: (0, 0)   # weights/biases: same block every step -> VMEM resident

    out = pl.pallas_call(
        _mlp_kernel,
        out_shape=jax.ShapeDtypeStruct((1, B), jnp.float32),
        grid=grid,
        in_specs=[
            pl.BlockSpec((dim_in, tb), lambda i: (0, i)),   # x^T: tiled over batch lanes
            pl.BlockSpec((d1, dim_in), const),              # w1 (bf16)
            pl.BlockSpec((d1, 1), const),                   # b1
            pl.BlockSpec((d2, d1), const),                  # w2 (bf16)
            pl.BlockSpec((d2, 1), const),                   # b2
            pl.BlockSpec((d3, d2), const),                  # w3 (bf16)
            pl.BlockSpec((d3, 1), const),                   # b3
            pl.BlockSpec((d3, 1), const),                   # w4 head column (f32)
            pl.BlockSpec((1, 1), const,
                         memory_space=pltpu.MemorySpace.SMEM),  # b4 scalar
        ],
        out_specs=pl.BlockSpec((1, tb), lambda i: (0, i)),  # lane-dense output row
        compiler_params=pltpu.CompilerParams(
            dimension_semantics=("parallel",),
        ),
    )(xT, w1b, b1c, w2b, b2c, w3b, b3c, w4c, b4c)
    return out.reshape(B, 1)


def init_params(key, dim_in, dim_layer1, dim_layer2, dim_layer3):
    """nn.Linear-style init, PyTorch-native layouts: weight (out, in), bias (out,)."""
    params = []
    for fan_in, fan_out in [(dim_in, dim_layer1), (dim_layer1, dim_layer2),
                            (dim_layer2, dim_layer3), (dim_layer3, 1)]:
        key, kw, kb = jax.random.split(key, 3)
        bound = 1.0 / float(fan_in) ** 0.5
        w = jax.random.uniform(kw, (fan_out, fan_in), jnp.float32, -bound, bound)
        b = jax.random.uniform(kb, (fan_out,), jnp.float32, -bound, bound)
        params += [w, b]
    return tuple(params)


def _reference(x, params):
    """Pure-JAX f32 reference matching the PyTorch module exactly."""
    w1, b1, w2, b2, w3, b3, w4, b4 = params
    h = jnp.maximum(x @ w1.T + b1, 0.0)
    h = jnp.maximum(h @ w2.T + b2, 0.0)
    h = jnp.maximum(h @ w3.T + b3, 0.0)
    return jax.nn.sigmoid(h @ w4.T + b4)


if __name__ == "__main__":
    key = jax.random.PRNGKey(0)
    B, dim_in, d1, d2, d3 = 8, 32, 64, 32, 16

    key, kx = jax.random.split(key)
    x = jax.random.normal(kx, (B, dim_in), jnp.float32)
    params = init_params(key, dim_in, d1, d2, d3)

    out = jax.block_until_ready(apiprefer_linear_net(x, params))
    ref = _reference(x, params)
    assert out.shape == (B, 1), out.shape
    # bf16 MXU operands (f32 accumulation) -> looser tolerance than the old f32 path.
    assert jnp.allclose(out, ref, atol=2e-2, rtol=0.0), "mismatch vs reference"

    # Ragged, multi-tile batch: 1000 rows with tile_b=512 -> 2 tiles, last partial.
    x2 = jax.random.normal(jax.random.PRNGKey(1), (1000, dim_in), jnp.float32)
    out2 = jax.block_until_ready(apiprefer_linear_net(x2, params, tile_b=512))
    ref2 = _reference(x2, params)
    assert out2.shape == (1000, 1), out2.shape
    assert jnp.allclose(out2, ref2, atol=2e-2, rtol=0.0), \
        "mismatch vs reference (tiled/ragged)"

    print("KERNEL_OK")
</pallas_src>

<mosaic_0001>
module attributes {stable_mosaic.version = 11 : i64} {
  func.func @_mlp_kernel(%arg0: i32, %arg1: memref<32x8xf32, #tpu.memory_space<vmem>>, %arg2: memref<64x32xbf16, #tpu.memory_space<vmem>>, %arg3: memref<64x1xf32, #tpu.memory_space<vmem>>, %arg4: memref<32x64xbf16, #tpu.memory_space<vmem>>, %arg5: memref<32x1xf32, #tpu.memory_space<vmem>>, %arg6: memref<16x32xbf16, #tpu.memory_space<vmem>>, %arg7: memref<16x1xf32, #tpu.memory_space<vmem>>, %arg8: memref<16x1xf32, #tpu.memory_space<vmem>>, %arg9: memref<1x1xf32, #tpu.memory_space<smem>>, %arg10: memref<1x8xf32, #tpu.memory_space<vmem>>) attributes {dimension_semantics = [#tpu.dimension_semantics<parallel>], iteration_bounds = array<i64: 1>, scalar_prefetch = 0 : i64, scratch_operands = 0 : i64, tpu.core_type = #tpu.core_type<tc>, window_params = [{transform_indices = @transform_0, window_bounds = array<i64: 32, 8>}, {pipeline_mode = #tpu.pipeline_mode<synchronous>, transform_indices = @transform_1, window_bounds = array<i64: 64, 32>}, {pipeline_mode = #tpu.pipeline_mode<synchronous>, transform_indices = @transform_2, window_bounds = array<i64: 64, 1>}, {pipeline_mode = #tpu.pipeline_mode<synchronous>, transform_indices = @transform_3, window_bounds = array<i64: 32, 64>}, {pipeline_mode = #tpu.pipeline_mode<synchronous>, transform_indices = @transform_4, window_bounds = array<i64: 32, 1>}, {pipeline_mode = #tpu.pipeline_mode<synchronous>, transform_indices = @transform_5, window_bounds = array<i64: 16, 32>}, {pipeline_mode = #tpu.pipeline_mode<synchronous>, transform_indices = @transform_6, window_bounds = array<i64: 16, 1>}, {pipeline_mode = #tpu.pipeline_mode<synchronous>, transform_indices = @transform_7, window_bounds = array<i64: 16, 1>}, {transform_indices = @transform_8, window_bounds = array<i64: 1, 1>}, {transform_indices = @transform_9, window_bounds = array<i64: 1, 8>}]} {
    %c0 = arith.constant 0 : index
    %c0_0 = arith.constant 0 : index
    %0 = vector.load %arg1[%c0, %c0_0] : memref<32x8xf32, #tpu.memory_space<vmem>>, vector<32x8xf32>
    %1 = arith.truncf %0 : vector<32x8xf32> to vector<32x8xbf16>
    %c0_1 = arith.constant 0 : index
    %c0_2 = arith.constant 0 : index
    %2 = vector.load %arg2[%c0_1, %c0_2] : memref<64x32xbf16, #tpu.memory_space<vmem>>, vector<64x32xbf16>
    %cst = arith.constant dense<0.000000e+00> : vector<64x8xf32>
    %3 = tpu.matmul %2, %1, %cst {dimension_numbers = #tpu.dot_dimension_numbers<[1], [0], [0], [1], [0, 0, 1, 1], [], []>} : vector<64x32xbf16>, vector<32x8xbf16>, vector<64x8xf32> -> vector<64x8xf32>
    %c0_3 = arith.constant 0 : index
    %c0_4 = arith.constant 0 : index
    %4 = vector.load %arg3[%c0_3, %c0_4] : memref<64x1xf32, #tpu.memory_space<vmem>>, vector<64x1xf32>
    %5 = vector.broadcast %4 : vector<64x1xf32> to vector<64x8xf32>
    %6 = arith.addf %3, %5 : vector<64x8xf32>
    %cst_5 = arith.constant 0.000000e+00 : f32
    %7 = vector.broadcast %cst_5 : f32 to vector<64x8xf32>
    %8 = arith.maximumf %6, %7 : vector<64x8xf32>
    %c0_6 = arith.constant 0 : index
    %c0_7 = arith.constant 0 : index
    %9 = vector.load %arg4[%c0_6, %c0_7] : memref<32x64xbf16, #tpu.memory_space<vmem>>, vector<32x64xbf16>
    %10 = arith.truncf %8 : vector<64x8xf32> to vector<64x8xbf16>
    %cst_8 = arith.constant dense<0.000000e+00> : vector<32x8xf32>
    %11 = tpu.matmul %9, %10, %cst_8 {dimension_numbers = #tpu.dot_dimension_numbers<[1], [0], [0], [1], [0, 0, 1, 1], [], []>} : vector<32x64xbf16>, vector<64x8xbf16>, vector<32x8xf32> -> vector<32x8xf32>
    %c0_9 = arith.constant 0 : index
    %c0_10 = arith.constant 0 : index
    %12 = vector.load %arg5[%c0_9, %c0_10] : memref<32x1xf32, #tpu.memory_space<vmem>>, vector<32x1xf32>
    %13 = vector.broadcast %12 : vector<32x1xf32> to vector<32x8xf32>
    %14 = arith.addf %11, %13 : vector<32x8xf32>
    %cst_11 = arith.constant 0.000000e+00 : f32
    %15 = vector.broadcast %cst_11 : f32 to vector<32x8xf32>
    %16 = arith.maximumf %14, %15 : vector<32x8xf32>
    %c0_12 = arith.constant 0 : index
    %c0_13 = arith.constant 0 : index
    %17 = vector.load %arg6[%c0_12, %c0_13] : memref<16x32xbf16, #tpu.memory_space<vmem>>, vector<16x32xbf16>
    %18 = arith.truncf %16 : vector<32x8xf32> to vector<32x8xbf16>
    %cst_14 = arith.constant dense<0.000000e+00> : vector<16x8xf32>
    %19 = tpu.matmul %17, %18, %cst_14 {dimension_numbers = #tpu.dot_dimension_numbers<[1], [0], [0], [1], [0, 0, 1, 1], [], []>} : vector<16x32xbf16>, vector<32x8xbf16>, vector<16x8xf32> -> vector<16x8xf32>
    %c0_15 = arith.constant 0 : index
    %c0_16 = arith.constant 0 : index
    %20 = vector.load %arg7[%c0_15, %c0_16] : memref<16x1xf32, #tpu.memory_space<vmem>>, vector<16x1xf32>
    %21 = vector.broadcast %20 : vector<16x1xf32> to vector<16x8xf32>
    %22 = arith.addf %19, %21 : vector<16x8xf32>
    %cst_17 = arith.constant 0.000000e+00 : f32
    %23 = vector.broadcast %cst_17 : f32 to vector<16x8xf32>
    %24 = arith.maximumf %22, %23 : vector<16x8xf32>
    %c0_18 = arith.constant 0 : index
    %c0_19 = arith.constant 0 : index
    %25 = vector.load %arg8[%c0_18, %c0_19] : memref<16x1xf32, #tpu.memory_space<vmem>>, vector<16x1xf32>
    %26 = vector.broadcast %25 : vector<16x1xf32> to vector<16x8xf32>
    %27 = arith.mulf %24, %26 : vector<16x8xf32>
    %cst_20 = arith.constant dense<0.000000e+00> : vector<8xf32>
    %28 = vector.multi_reduction <add>, %27, %cst_20 [0] : vector<16x8xf32> to vector<8xf32>
    %29 = vector.shape_cast %28 : vector<8xf32> to vector<1x8xf32>
    %c0_21 = arith.constant 0 : index
    %c0_22 = arith.constant 0 : index
    %30 = memref.load %arg9[%c0_21, %c0_22] : memref<1x1xf32, #tpu.memory_space<smem>>
    %31 = vector.broadcast %30 : f32 to vector<1x8xf32>
    %32 = arith.addf %29, %31 : vector<1x8xf32>
    %33 = arith.negf %32 : vector<1x8xf32>
    %34 = math.exp %33 : vector<1x8xf32>
    %cst_23 = arith.constant 1.000000e+00 : f32
    %35 = vector.broadcast %cst_23 : f32 to vector<1x8xf32>
    %36 = arith.addf %35, %34 : vector<1x8xf32>
    %37 = arith.divf %35, %36 : vector<1x8xf32>
    %c0_24 = arith.constant 0 : index
    %c0_25 = arith.constant 0 : index
    %38 = vector.load %arg10[%c0_24, %c0_25] : memref<1x8xf32, #tpu.memory_space<vmem>>, vector<1x8xf32>
    tpu.vector_store %arg10[%c0_24, %c0_25], %37 {strides = array<i32>} : memref<1x8xf32, #tpu.memory_space<vmem>>, vector<1x8xf32>,
    return
  }
  func.func @transform_0(%arg0: i32) -> (i32, i32) {
    %c0_i32 = arith.constant 0 : i32
    %c0_i32_0 = arith.constant 0 : i32
    return %c0_i32, %arg0 : i32, i32
  }
  func.func @transform_1(%arg0: i32) -> (i32, i32) {
    %c0_i32 = arith.constant 0 : i32
    %c0_i32_0 = arith.constant 0 : i32
    %c0_i32_1 = arith.constant 0 : i32
    return %c0_i32, %c0_i32_0 : i32, i32
  }
  func.func @transform_2(%arg0: i32) -> (i32, i32) {
    %c0_i32 = arith.constant 0 : i32
    %c0_i32_0 = arith.constant 0 : i32
    %c0_i32_1 = arith.constant 0 : i32
    return %c0_i32, %c0_i32_0 : i32, i32
  }
  func.func @transform_3(%arg0: i32) -> (i32, i32) {
    %c0_i32 = arith.constant 0 : i32
    %c0_i32_0 = arith.constant 0 : i32
    %c0_i32_1 = arith.constant 0 : i32
    return %c0_i32, %c0_i32_0 : i32, i32
  }
  func.func @transform_4(%arg0: i32) -> (i32, i32) {
    %c0_i32 = arith.constant 0 : i32
    %c0_i32_0 = arith.constant 0 : i32
    %c0_i32_1 = arith.constant 0 : i32
    return %c0_i32, %c0_i32_0 : i32, i32
  }
  func.func @transform_5(%arg0: i32) -> (i32, i32) {
    %c0_i32 = arith.constant 0 : i32
    %c0_i32_0 = arith.constant 0 : i32
    %c0_i32_1 = arith.constant 0 : i32
    return %c0_i32, %c0_i32_0 : i32, i32
  }
  func.func @transform_6(%arg0: i32) -> (i32, i32) {
    %c0_i32 = arith.constant 0 : i32
    %c0_i32_0 = arith.constant 0 : i32
    %c0_i32_1 = arith.constant 0 : i32
    return %c0_i32, %c0_i32_0 : i32, i32
  }
  func.func @transform_7(%arg0: i32) -> (i32, i32) {
    %c0_i32 = arith.constant 0 : i32
    %c0_i32_0 = arith.constant 0 : i32
    %c0_i32_1 = arith.constant 0 : i32
    return %c0_i32, %c0_i32_0 : i32, i32
  }
  func.func @transform_8(%arg0: i32) -> (i32, i32) {
    %c0_i32 = arith.constant 0 : i32
    %c0_i32_0 = arith.constant 0 : i32
    %c0_i32_1 = arith.constant 0 : i32
    return %c0_i32, %c0_i32_0 : i32, i32
  }
  func.func @transform_9(%arg0: i32) -> (i32, i32) {
    %c0_i32 = arith.constant 0 : i32
    %c0_i32_0 = arith.constant 0 : i32
    return %c0_i32, %arg0 : i32, i32
  }
}

</mosaic_0001>

<bundles_post_ra>
// kernel: tpu_custom_call.1
= control target key start
LH: loop header
LB: loop body
LE: loop exit
PB: predicated region body
PF: predicated region fallthrough
CT: control target
= control target key end

     0   :  { %v423_v3 = vmov 0   ;;  %s567_s0 = inlined_call_operand.vmem [shape: f32[32,8], index: 0, kind: input, shape index: {}]   ;;  %s568_s1 = inlined_call_operand.vmem [shape: bf16[64,32], index: 1, kind: input, shape index: {}]   ;;  %s569_s2 = inlined_call_operand.vmem [shape: f32[64,1], index: 2, kind: input, shape index: {}]   ;;  %s570_s3 = inlined_call_operand.vmem [shape: bf16[32,64], index: 3, kind: input, shape index: {}]   ;;  %s571_s4 = inlined_call_operand.vmem [shape: f32[32,1], index: 4, kind: input, shape index: {}]   ;;  %s572_s5 = inlined_call_operand.vmem [shape: bf16[16,32], index: 5, kind: input, shape index: {}]   ;;  %s573_s6 = inlined_call_operand.vmem [shape: f32[16,1], index: 6, kind: input, shape index: {}]   ;;  %s574_s7 = inlined_call_operand.vmem [shape: f32[16,1], index: 7, kind: input, shape index: {}]   ;;  %s575_s8 = inlined_call_operand.<no memory space> [shape: f32[1,1], index: 8, kind: input, shape index: {}]   ;;  %s576_s9 = inlined_call_operand.hbm [shape: f32[1,8], index: 9, kind: output, shape index: {}]  }
   0x1   :  { %v55_v0 = vld [vmem:[%s569_s2 + $0x30] sm:$0xff]  ;;  %v38_v2 = vld [vmem:[%s567_s0 + $0x18] sm:$0xff]  ;;  %390 = vset.pattern.permute.xlu0 %v423_v3  ;;  %v35_v5 = vld [vmem:[%s567_s0] sm:$0xff]  ;;  %391 = vset.pattern.permute.xlu1 %v423_v3 }
   0x2   :  { %v37_v1 = vld [vmem:[%s567_s0 + $0x10] sm:$0xff]  ;;  %v36_v6 = vld [vmem:[%s567_s0 + $0x8] sm:$0xff]  ;;  %89 = vperm.xlu0 %390, %v55_v0   ;;  %v53_v7 = vld [vmem:[%s569_s2 + $0x20] sm:$0xff]  ;;  %392 = vset.pattern.permute.xlu2 %v423_v3 }
   0x3   :  { %v40_v4 = vpack.c.bf16 %v38_v2, %v37_v1  ;;  %v39_v8 = vpack.c.bf16 %v36_v6, %v35_v5  ;;  %79 = vperm.xlu1 %391, %v53_v7   ;;  %v51_v9 = vld [vmem:[%s569_s2 + $0x10] sm:$0xff] }
   0x4   :  { %v381_v10 = vld [vmem:[%s568_s1 + $0x10] sm:$0xff]  ;;  %69 = vperm.xlu2 %392, %v51_v9  }
   0x5   :  { %386 = vmatpush.bf16.msra.mxu3 %v40_v4  ;;  %136 = vmatpush.bf16.msra.mxu0 %v40_v4 }
   0x6   :  { %15 = vsyncpa [#allocation4], 0  ;;  %vm117_vm0 = vcmask 261120   ;;  %v56_v11 = vld [vmem:[%s569_s2 + $0x38] sm:$0xff]  ;;  %v379_v12 = vld [vmem:[%s568_s1] sm:$0xff]  ;;  %vm209_vm1 = vcmask 523264  }
   0x7   :  { %v54_v13 = vld [vmem:[%s569_s2 + $0x28] sm:$0xff]  ;;  %v52_v14 = vld [vmem:[%s569_s2 + $0x18] sm:$0xff]  ;;  %v49_v15 = vld [vmem:[%s569_s2] sm:$0xff]  ;;  %vm293_vm2 = vcmask 64512   ;;  %s424_s14 = smov [#allocation3]   ;;  %vm325_vm6 = vcmask 57344  }
   0x8   :  { %v50_v16 = vld [vmem:[%s569_s2 + $0x8] sm:$0xff]  ;;  %v177_v17 = vld [vmem:[%s571_s4 + $0x10] sm:$0xff]  ;;  %v382_v18 = vld [vmem:[%s568_s1 + $0x18] sm:$0xff]  ;;  %s332_s15 = sshll.u32 %s424_s14, 4  ;;  %s333_s15 = int_to_ptr.vmem [resolvable:$true] %s332_s15 }
   0x9   :  { %387 = vmatpush.bf16.msra.mxu3 %v39_v8  ;;  %137 = vmatpush.bf16.msra.mxu0 %v39_v8  ;;  %v178_v19 = vld [vmem:[%s571_s4 + $0x18] sm:$0xff]  ;;  %v380_v20 = vld [vmem:[%s568_s1 + $0x8] sm:$0xff]  ;;  %v175_v21 = vld [vmem:[%s571_s4] sm:$0xff] }
   0xa   :  { %94 = vperm.xlu0 %390, %v56_v11   ;;  %v176_v22 = vld [vmem:[%s571_s4 + $0x8] sm:$0xff]  ;;  %v243_v23 = vld [vmem:[%s573_s6] sm:$0xff] }
   0xb   :  { %84 = vperm.xlu1 %391, %v54_v13   ;;  %v244_v24 = vld [vmem:[%s573_s6 + $0x8] sm:$0xff]  ;;  %v279_v25 = vld [vmem:[%s574_s7] sm:$0xff] }
   0xc   :  { %361 = vmatmul.msk.bf16.vlgmr.msra.gmra.mxu3 %vm117_vm0, %v381_v10  ;;  %359 = vmatmul.msk.bf16.vlgmr.msra.gmra.mxu0 %vm117_vm0, %v379_v12  ;;  %v280_v26 = vld [vmem:[%s574_s7 + $0x8] sm:$0xff]  ;;  %v383_v63 = vld [vmem:[%s570_s3] sm:$0xff] }
   0xd   :  { %74 = vperm.xlu2 %392, %v52_v14   ;;  %v384_v0 = vld [vmem:[%s570_s3 + $0x8] sm:$0xff] }
  0x12   :  { %59 = vperm.xlu0 %390, %v49_v15  }
  0x13   :  { %64 = vperm.xlu1 %391, %v50_v16  }
  0x15   :  { %191 = vperm.xlu2 %392, %v177_v17  }
  0x1a   :  { %196 = vperm.xlu0 %390, %v178_v19   ;;  %v385_v19 = vld [vmem:[%s572_s5] sm:$0xff] }
  0x1b   :  { %181 = vperm.xlu1 %391, %v175_v21  }
  0x1c   :  { %362 = vmatmul.msk.bf16.gmra.mxu3 %vm117_vm0, %v382_v18  ;;  %360 = vmatmul.msk.bf16.gmra.mxu0 %vm117_vm0, %v380_v20 }
  0x1d   :  { %186 = vperm.xlu2 %392, %v176_v22  }
  0x22   :  { %247 = vperm.xlu0 %390, %v243_v23  }
  0x23   :  { %252 = vperm.xlu1 %391, %v244_v24  }
  0x25   :  { %283 = vperm.xlu2 %392, %v279_v25  }
  0x2a   :  { %288 = vperm.xlu0 %390, %v280_v26  }
  0x5e   :  { %v70_v35 = vpop.permute.xlu2 %69 }
  0x67   :  { %v75_v46 = vpop.permute.xlu2 %74 }
  0x6f   :  { %v192_v3 = vpop.permute.xlu2 %191 }
  0x74   :  { %v90_v31 = vpop.permute.xlu0 %89 }
  0x75   :  { %v80_v32 = vpop.permute.xlu1 %79 }
  0x77   :  { %v187_v5 = vpop.permute.xlu2 %186 }
  0x7c   :  { %v95_v36 = vpop.permute.xlu0 %94 }
  0x7d   :  { %v85_v37 = vpop.permute.xlu1 %84 }
  0x84   :  { %v60_v51 = vpop.permute.xlu0 %59 }
  0x85   :  { %v65_v54 = vpop.permute.xlu1 %64 }
  0x89   :  { %v139_v27 = vpop.f32.mrf.mxu0 }
  0x8a   :  { %v140_v53 = vadd.f32 %v139_v27, %v60_v51  ;;  %v284_v27 = vpop.permute.xlu2 %283 }
  0x8c   :  { %v159_v59 = vmax.f32 %v140_v53, 0.0  ;;  %v197_v7 = vpop.permute.xlu0 %196 }
  0x8d   :  { %v182_v11 = vpop.permute.xlu1 %181 }
  0x8f   :  { %v149_v28 = vpop.f32.mrf.mxu3 }
  0x90   :  { %v150_v43 = vadd.f32 %v149_v28, %v80_v32 }
  0x91   :  { %v141_v29 = vpop.f32.mrf.mxu0 }
  0x92   :  { %v163_v52 = vmax.f32 %v150_v43, 0.0  ;;  %v142_v55 = vadd.f32 %v141_v29, %v65_v54 }
  0x94   :  { %v160_v60 = vmax.f32 %v142_v55, 0.0  ;;  %v248_v21 = vpop.permute.xlu0 %247 }
  0x95   :  { %v253_v24 = vpop.permute.xlu1 %252 }
  0x96   :  { %v171_v62 = vpack.c.bf16 %v160_v60, %v159_v59 }
  0x97   :  { %v151_v30 = vpop.f32.mrf.mxu3 }
  0x98   :  { %v152_v40 = vadd.f32 %v151_v30, %v85_v37 }
  0x99   :  { %v144_v33 = vpop.f32.mrf.mxu0 }
  0x9a   :  { %v164_v47 = vmax.f32 %v152_v40, 0.0  ;;  %v145_v48 = vadd.f32 %v144_v33, %v70_v35  ;;  %v304_v40 = vstv %s575_s8  ;;  %s334_s8 = sshll.u32 %s576_s9, 4  ;;  %s335_s8 = int_to_ptr.hbm [resolvable:$true] %s334_s8 }
  0x9c   :  { %v161_v56 = vmax.f32 %v145_v48, 0.0  ;;  %v173_v58 = vpack.c.bf16 %v164_v47, %v163_v52  ;;  %v289_v30 = vpop.permute.xlu0 %288 }
  0x9f   :  { %v154_v34 = vpop.f32.mrf.mxu3 }
  0xa0   :  { %v155_v38 = vadd.f32 %v154_v34, %v90_v31 }
  0xa1   :  { %v146_v42 = vpop.f32.mrf.mxu0 }
  0xa2   :  { %v165_v44 = vmax.f32 %v155_v38, 0.0  ;;  %v147_v49 = vadd.f32 %v146_v42, %v75_v46 }
  0xa4   :  { %v162_v57 = vmax.f32 %v147_v49, 0.0 }
  0xa6   :  { %v172_v61 = vpack.c.bf16 %v162_v57, %v161_v56 }
  0xa7   :  { %v156_v39 = vpop.f32.mrf.mxu3 }
  0xa8   :  { %v157_v41 = vadd.f32 %v156_v39, %v95_v36 }
  0xaa   :  { %v166_v45 = vmax.f32 %v157_v41, 0.0 }
  0xac   :  { %v174_v50 = vpack.c.bf16 %v166_v45, %v165_v44 }
  0xae   :  { %220 = vmatpush.bf16.msra.mxu1 %v174_v50 }
  0xb2   :  { %221 = vmatpush.bf16.msra.mxu1 %v173_v58 }
  0xb6   :  { %222 = vmatpush.bf16.msra.mxu1 %v172_v61 }
  0xba   :  { %223 = vmatpush.bf16.msra.mxu1 %v171_v62 }
  0xbd   :  { %371 = vmatmul.msk.bf16.vlgmr.msra.gmra.mxu1 %vm209_vm1, %v383_v63 }
  0xcd   :  { %372 = vmatmul.msk.bf16.gmra.mxu1 %vm209_vm1, %v384_v0 }
 0x13a   :  { %v225_v1 = vpop.f32.mrf.mxu1 }
 0x13b   :  { %v226_v12 = vadd.f32 %v225_v1, %v182_v11 }
 0x13d   :  { %v235_v17 = vmax.f32 %v226_v12, 0.0 }
 0x142   :  { %v227_v2 = vpop.f32.mrf.mxu1 }
 0x143   :  { %v228_v9 = vadd.f32 %v227_v2, %v187_v5 }
 0x145   :  { %v236_v15 = vmax.f32 %v228_v9, 0.0 }
 0x147   :  { %v241_v18 = vpack.c.bf16 %v236_v15, %v235_v17 }
 0x14a   :  { %v230_v4 = vpop.f32.mrf.mxu1 }
 0x14b   :  { %v231_v6 = vadd.f32 %v230_v4, %v192_v3 }
 0x14d   :  { %v237_v13 = vmax.f32 %v231_v6, 0.0 }
 0x152   :  { %v232_v8 = vpop.f32.mrf.mxu1 }
 0x153   :  { %v233_v10 = vadd.f32 %v232_v8, %v197_v7 }
 0x155   :  { %v238_v14 = vmax.f32 %v233_v10, 0.0 }
 0x157   :  { %v242_v16 = vpack.c.bf16 %v238_v14, %v237_v13 }
 0x159   :  { %269 = vmatpush.bf16.msra.mxu2 %v242_v16 }
 0x15d   :  { %270 = vmatpush.bf16.msra.mxu2 %v241_v18 }
 0x160   :  { %377 = vmatmul.msk.bf16.vlgmr.msra.gmra.mxu2 %vm117_vm0, %v385_v19 }
 0x1e3   :  { %v272_v20 = vpop.f32.mrf.mxu2 }
 0x1e4   :  { %v273_v22 = vadd.f32 %v272_v20, %v248_v21 }
 0x1e6   :  { %v277_v23 = vmax.f32 %v273_v22, 0.0 }
 0x1e8   :  { %v291_v28 = vmul.f32 %v284_v27, %v277_v23 }
 0x1ea   :  { %v294_v32 = vsel %vm293_vm2, %v291_v28, 0.0 }
 0x1eb   :  { %v274_v25 = vpop.f32.mrf.mxu2 }
 0x1ec   :  { %v275_v26 = vadd.f32 %v274_v25, %v253_v24 }
 0x1ee   :  { %v278_v29 = vmax.f32 %v275_v26, 0.0 }
 0x1f0   :  { %v292_v31 = vmul.f32 %v289_v30, %v278_v29 }
 0x1f2   :  { %v295_v33 = vsel %vm293_vm2, %v292_v31, 0.0 }
 0x1f3   :  { %v296_v34 = vadd.f32 %v295_v33, %v294_v32 }
 0x1f5   :  { %v297_v35 = vrot.slane %v296_v34, 4 }
 0x1f7   :  { %v298_v36 = vadd.f32 %v297_v35, %v296_v34 }
 0x1f9   :  { %v299_v37 = vrot.slane %v298_v36, 2 }
 0x1fb   :  { %v300_v38 = vadd.f32 %v299_v37, %v298_v36 }
 0x1fd   :  { %v301_v39 = vrot.slane %v300_v38, 1 }
 0x1ff   :  { %v302_v41 = vadd.f32 %v301_v39, %v300_v38 }
 0x201   :  { %v305_v42 = vadd.f32 %v304_v40, %v302_v41 }
 0x203   :  { %v378_v43 = vmul.f32 -1.442695, %v305_v42 }
 0x205   :  { %393 = vpow2.f32 %v378_v43 }
 0x20b   :  { %v394_v44 = vpop.eup %393 }
 0x20c   :  { %v309_v45 = vadd.f32 1.0, %v394_v44 }
 0x20e   :  { %395 = vrcp.f32 %v309_v45  ;;  %v321_v49 = vand.u32 2147483648, %v309_v45  ;;  %v319_v51 = vand.u32 2147483647, %v309_v45  ;;  %vm315_vm4 = vweird.f32 %v309_v45 }
 0x210   :  { %v322_v53 = vor.u32 1.1754944e-38, %v321_v49  ;;  %vm320_vm7 = vcmp.eq.f32.partialorder %v319_v51, 8.507059e+37 }
 0x214   :  { %v396_v46 = vpop.eup %395 }
 0x215   :  { %v311_v47 = vmul.f32 %v396_v46, %v309_v45  ;;  %vm316_vm3 = vweird.f32 %v396_v46 }
 0x216   :  { %vm317_vm5 = vmor %vm315_vm4, %vm316_vm3 }
 0x217   :  { %v312_v48 = vsub.f32 1.0, %v311_v47 }
 0x219   :  { %v313_v50 = vmul.f32 %v396_v46, %v312_v48 }
 0x21b   :  { %v314_v52 = vadd.f32 %v396_v46, %v313_v50 }
 0x21d   :  { %v318_v54 = vsel %vm317_vm5, %v396_v46, %v314_v52 }
 0x21e   :  { %v323_v55 = vsel %vm320_vm7, %v322_v53, %v318_v54 }
 0x21f   :  { %326 = vst.msk [vmem:[#allocation3] sm:$0x1] %vm325_vm6, %v323_v55 }
 0x220   :  { %337 = dma.vmem_to_hbm [thread:$0]  %s333_s15, 16, %s335_s8, [#allocation4]  }
 0x221   :  { %421 = dma.done.wait [#allocation4], 16  }
 0x222   :  { %422 = vsyncadd [#allocation4], 4294967280 }
 0x223   :  { %342 = vsyncpa [#allocation4], 1 }

</bundles_post_ra>
